<compile_context>
chip_gen: v6e
topology: v6e:2x2x1
jax: 0.10.0
libtpu: 0.0.40
codegen_flags: <defaults>
</compile_context>

<pallas_src>
import functools
import math

import jax
import jax.numpy as jnp
from jax.experimental import pallas as pl
from jax.experimental.pallas import tpu as pltpu


# Scoped VMEM budget for every pallas_call.  32 MiB is safe on v5e/v6e
# (128 MiB physical) and on v7x (64 MiB physical), and well above what the
# chosen tile sizes need (~3 MiB double-buffered for 256x256x512 f32 tiles).
VMEM_LIMIT_BYTES = 32 * 1024 * 1024


def _round_up(v, m):
    return ((v + m - 1) // m) * m


def _pad_and_tile(dim, target, align):
    """Return (padded_dim, tile) such that tile divides padded_dim and tile
    is either `target` (for large dims) or the whole padded dim (small dims),
    padded to `align` for lane/sublane friendliness."""
    if dim >= target:
        padded = _round_up(dim, target)
        return padded, target
    padded = _round_up(dim, align)
    return padded, padded


# -----------------------------------------------------------------------------
# Tiled linear kernel:  out = act(x @ w + b)
# -----------------------------------------------------------------------------
def _matmul_kernel(x_ref, w_ref, b_ref, o_ref, acc_ref, *, activation):
    k = pl.program_id(2)

    @pl.when(k == 0)
    def _():
        acc_ref[...] = jnp.zeros_like(acc_ref)

    # bf16 MXU operands, f32 accumulation (v6e/v7x fast path; fine on v5e).
    acc_ref[...] += jnp.dot(
        x_ref[...].astype(jnp.bfloat16),
        w_ref[...].astype(jnp.bfloat16),
        preferred_element_type=jnp.float32,
    )

    @pl.when(k == pl.num_programs(2) - 1)
    def _():
        y = acc_ref[...] + b_ref[...].astype(jnp.float32)
        if activation == "relu":
            y = jnp.maximum(y, 0.0)
        o_ref[...] = y.astype(o_ref.dtype)


def linear(x, w, b, activation=None, *, tm=256, tn=256, tk=512):
    """x: (M, K), w: (K, N), b: (N,) -> (M, N).  Tiled + pipelined."""
    M, K = x.shape
    N = w.shape[1]
    Mp, tm = _pad_and_tile(M, tm, 8)
    Kp, tk = _pad_and_tile(K, tk, 128)
    Np, tn = _pad_and_tile(N, tn, 128)

    xp = x if (Mp == M and Kp == K) else jnp.pad(x, ((0, Mp - M), (0, Kp - K)))
    wp = w if (Kp == K and Np == N) else jnp.pad(w, ((0, Kp - K), (0, Np - N)))
    bp = b if Np == N else jnp.pad(b, (0, Np - N))

    out = pl.pallas_call(
        functools.partial(_matmul_kernel, activation=activation),
        out_shape=jax.ShapeDtypeStruct((Mp, Np), x.dtype),
        grid=(Mp // tm, Np // tn, Kp // tk),
        in_specs=[
            pl.BlockSpec((tm, tk), lambda i, j, k: (i, k)),
            pl.BlockSpec((tk, tn), lambda i, j, k: (k, j)),
            pl.BlockSpec((1, tn), lambda i, j, k: (0, j)),
        ],
        out_specs=pl.BlockSpec((tm, tn), lambda i, j, k: (i, j)),
        scratch_shapes=[pltpu.VMEM((tm, tn), jnp.float32)],
        compiler_params=pltpu.CompilerParams(
            dimension_semantics=("parallel", "parallel", "arbitrary"),
            vmem_limit_bytes=VMEM_LIMIT_BYTES,
        ),
    )(xp, wp, bp.reshape(1, Np))

    if Mp != M or Np != N:
        out = out[:M, :N]
    return out


# -----------------------------------------------------------------------------
# LayerNorm with fused residual add:  out = LN(x + res) * gamma + beta
# -----------------------------------------------------------------------------
def _layernorm_res_kernel(x_ref, r_ref, g_ref, b_ref, o_ref, *, eps):
    x = x_ref[...].astype(jnp.float32) + r_ref[...].astype(jnp.float32)
    mu = jnp.mean(x, axis=-1, keepdims=True)
    var = jnp.mean((x - mu) * (x - mu), axis=-1, keepdims=True)
    y = (x - mu) * jax.lax.rsqrt(var + eps)
    o_ref[...] = (y * g_ref[...] + b_ref[...]).astype(o_ref.dtype)


def layernorm_residual(x, res, gamma, beta, eps=1e-5, *, tm=512):
    """x, res: (M, D) -> LN over last dim of (x + res)."""
    M, D = x.shape
    Mp, tm = _pad_and_tile(M, tm, 8)
    xp = x if Mp == M else jnp.pad(x, ((0, Mp - M), (0, 0)))
    rp = res if Mp == M else jnp.pad(res, ((0, Mp - M), (0, 0)))

    out = pl.pallas_call(
        functools.partial(_layernorm_res_kernel, eps=eps),
        out_shape=jax.ShapeDtypeStruct((Mp, D), x.dtype),
        grid=(Mp // tm,),
        in_specs=[
            pl.BlockSpec((tm, D), lambda i: (i, 0)),
            pl.BlockSpec((tm, D), lambda i: (i, 0)),
            pl.BlockSpec((1, D), lambda i: (0, 0)),
            pl.BlockSpec((1, D), lambda i: (0, 0)),
        ],
        out_specs=pl.BlockSpec((tm, D), lambda i: (i, 0)),
        compiler_params=pltpu.CompilerParams(
            dimension_semantics=("parallel",),
            vmem_limit_bytes=VMEM_LIMIT_BYTES,
        ),
    )(xp, rp, gamma.reshape(1, D), beta.reshape(1, D))

    return out[:M] if Mp != M else out


# -----------------------------------------------------------------------------
# Masked multi-head attention, one batch element per grid step.
# q/k/v blocks are lane-dense (S, D) with all heads; heads are sliced inside
# the kernel with static slices and the output is assembled into one dense
# (Sq, D) store.  The (Sq, Sk) mask is DMA'd once per batch (not per head).
# TODO(synk): for long sequences convert to the online-softmax (flash) pattern
#             with Sk tiled as a second grid axis and m/l/acc VMEM scratch.
# -----------------------------------------------------------------------------
def _attention_kernel(q_ref, k_ref, v_ref, m_ref, o_ref, *, n_head, scale):
    q = q_ref[...]          # (Sq, D) f32
    k = k_ref[...]          # (Sk, D) f32
    v = v_ref[...]          # (Sk, D) f32
    m = m_ref[...]          # (Sq, Sk) f32, 1 = keep, 0 = mask
    d_head = q.shape[-1] // n_head

    outs = []
    for h in range(n_head):
        lo, hi = h * d_head, (h + 1) * d_head
        qh = q[:, lo:hi].astype(jnp.bfloat16)
        kh = k[:, lo:hi].astype(jnp.bfloat16)
        vh = v[:, lo:hi].astype(jnp.bfloat16)
        # scores = qh @ kh^T  (contract over d_head, no explicit transpose)
        s = jax.lax.dot_general(
            qh, kh, (((1,), (1,)), ((), ())),
            preferred_element_type=jnp.float32) * scale
        s = jnp.where(m > 0, s, -10000.0)   # masked_fill(mask == 0, -10000)
        s = s - jnp.max(s, axis=-1, keepdims=True)
        p = jnp.exp(s)
        p = p * pl.reciprocal(jnp.sum(p, axis=-1, keepdims=True), approx=True)
        outs.append(jnp.dot(p.astype(jnp.bfloat16), vh,
                            preferred_element_type=jnp.float32))
    o_ref[...] = jnp.concatenate(outs, axis=-1).astype(o_ref.dtype)


def attention(q, k, v, mask, n_head):
    """q: (B, Sq, D), k/v: (B, Sk, D), mask: (B, 1, Sq, Sk) -> (B, Sq, D)."""
    B, Sq, D = q.shape
    Sk = k.shape[1]
    scale = 1.0 / math.sqrt(D // n_head)
    return pl.pallas_call(
        functools.partial(_attention_kernel, n_head=n_head, scale=scale),
        out_shape=jax.ShapeDtypeStruct((B, Sq, D), q.dtype),
        grid=(B,),
        in_specs=[
            pl.BlockSpec((pl.Squeezed(), Sq, D), lambda b: (b, 0, 0)),
            pl.BlockSpec((pl.Squeezed(), Sk, D), lambda b: (b, 0, 0)),
            pl.BlockSpec((pl.Squeezed(), Sk, D), lambda b: (b, 0, 0)),
            pl.BlockSpec((pl.Squeezed(), pl.Squeezed(), Sq, Sk),
                         lambda b: (b, 0, 0, 0)),
        ],
        out_specs=pl.BlockSpec((pl.Squeezed(), Sq, D), lambda b: (b, 0, 0)),
        compiler_params=pltpu.CompilerParams(
            dimension_semantics=("parallel",),
            vmem_limit_bytes=VMEM_LIMIT_BYTES,
        ),
    )(q, k, v, mask.astype(jnp.float32))


# -----------------------------------------------------------------------------
# Model pieces (plain-JAX orchestration of the Pallas kernels)
# -----------------------------------------------------------------------------
def sinusoidal_positions(max_len, d_model):
    pos = jnp.arange(max_len, dtype=jnp.float32)[:, None]
    i2 = jnp.arange(0, d_model, 2, dtype=jnp.float32)[None, :]
    angle = pos / jnp.power(10000.0, i2 / d_model)
    pe = jnp.zeros((max_len, d_model), dtype=jnp.float32)
    pe = pe.at[:, 0::2].set(jnp.sin(angle))
    pe = pe.at[:, 1::2].set(jnp.cos(angle))
    return pe


def self_attention_block(p, x, mask, n_head):
    B, S, D = x.shape
    # Fused Q/K/V projection: one (D, 3D) matmul instead of three launches.
    qkv = linear(x.reshape(B * S, D), p["w_in"], p["b_in"]).reshape(B, S, 3 * D)
    q = qkv[..., :D]
    k = qkv[..., D:2 * D]
    v = qkv[..., 2 * D:]
    o = attention(q, k, v, mask, n_head)
    return linear(o.reshape(B * S, D), p["wo"], p["bo"]).reshape(B, S, D)


def cross_attention_block(p, x, enc, mask, n_head):
    B, Sq, D = x.shape
    Sk = enc.shape[1]
    q = linear(x.reshape(B * Sq, D), p["wq"], p["bq"]).reshape(B, Sq, D)
    # Fused K/V projection on the encoder memory.
    kv = linear(enc.reshape(B * Sk, D), p["w_kv"], p["b_kv"]).reshape(B, Sk, 2 * D)
    k = kv[..., :D]
    v = kv[..., D:]
    o = attention(q, k, v, mask, n_head)
    return linear(o.reshape(B * Sq, D), p["wo"], p["bo"]).reshape(B, Sq, D)


def decode_layer(p, dec, enc, t_mask, s_mask, n_head):
    B, S, D = dec.shape
    # 1) masked self-attention + add & norm (residual fused into LN kernel)
    # TODO(synk): dropout is identity (inference / eval mode).
    a = self_attention_block(p["self_attn"], dec, t_mask, n_head)
    x = layernorm_residual(a.reshape(B * S, D), dec.reshape(B * S, D),
                           p["ln1_g"], p["ln1_b"]).reshape(B, S, D)
    # 2) encoder-decoder cross-attention + add & norm
    c = cross_attention_block(p["cross_attn"], x, enc, s_mask, n_head)
    x = layernorm_residual(c.reshape(B * S, D), x.reshape(B * S, D),
                           p["ln2_g"], p["ln2_b"]).reshape(B, S, D)
    # 3) position-wise FFN (linear -> relu -> linear) + add & norm
    h = linear(x.reshape(B * S, D), p["ffn_w1"], p["ffn_b1"], activation="relu")
    h = linear(h, p["ffn_w2"], p["ffn_b2"])
    x = layernorm_residual(h, x.reshape(B * S, D),
                           p["ln3_g"], p["ln3_b"]).reshape(B, S, D)
    return x


def decoder_forward(params, dec_ids, enc, t_mask, s_mask, n_head):
    B, S = dec_ids.shape
    D = params["tok_emb"].shape[1]
    # TotalEmbedding: token embedding + sinusoidal positional encoding (+dropout=id)
    # TODO(synk): embedding gather done with jnp.take in host JAX (data-dependent gather).
    tok = jnp.take(params["tok_emb"], dec_ids, axis=0)            # (B, S, D)
    x = tok + params["pos_enc"][:S][None, :, :]
    for lp in params["layers"]:
        x = decode_layer(lp, x, enc, t_mask, s_mask, n_head)
    # final fc to vocabulary (tiled matmul handles large vocab sizes)
    V = params["fc_w"].shape[1]
    logits = linear(x.reshape(B * S, D), params["fc_w"], params["fc_b"]).reshape(B, S, V)
    return logits


# -----------------------------------------------------------------------------
# Deterministic parameter initialization
# -----------------------------------------------------------------------------
def init_self_attn_params(key, d_model):
    k1, k2 = jax.random.split(key)
    return {
        "w_in": jax.random.normal(k1, (d_model, 3 * d_model), jnp.float32) * 0.02,
        "b_in": jnp.zeros((3 * d_model,), jnp.float32),
        "wo": jax.random.normal(k2, (d_model, d_model), jnp.float32) * 0.02,
        "bo": jnp.zeros((d_model,), jnp.float32),
    }


def init_cross_attn_params(key, d_model):
    k1, k2, k3 = jax.random.split(key, 3)
    return {
        "wq": jax.random.normal(k1, (d_model, d_model), jnp.float32) * 0.02,
        "bq": jnp.zeros((d_model,), jnp.float32),
        "w_kv": jax.random.normal(k2, (d_model, 2 * d_model), jnp.float32) * 0.02,
        "b_kv": jnp.zeros((2 * d_model,), jnp.float32),
        "wo": jax.random.normal(k3, (d_model, d_model), jnp.float32) * 0.02,
        "bo": jnp.zeros((d_model,), jnp.float32),
    }


def init_layer_params(key, d_model, ffn_hidden):
    ks = jax.random.split(key, 4)
    return {
        "self_attn": init_self_attn_params(ks[0], d_model),
        "cross_attn": init_cross_attn_params(ks[1], d_model),
        "ffn_w1": jax.random.normal(ks[2], (d_model, ffn_hidden), jnp.float32) * 0.02,
        "ffn_b1": jnp.zeros((ffn_hidden,), jnp.float32),
        "ffn_w2": jax.random.normal(ks[3], (ffn_hidden, d_model), jnp.float32) * 0.02,
        "ffn_b2": jnp.zeros((d_model,), jnp.float32),
        "ln1_g": jnp.ones((d_model,), jnp.float32), "ln1_b": jnp.zeros((d_model,), jnp.float32),
        "ln2_g": jnp.ones((d_model,), jnp.float32), "ln2_b": jnp.zeros((d_model,), jnp.float32),
        "ln3_g": jnp.ones((d_model,), jnp.float32), "ln3_b": jnp.zeros((d_model,), jnp.float32),
    }


def init_decoder_params(key, dec_voc_size, max_len, d_model, ffn_hidden, n_layer):
    ks = jax.random.split(key, n_layer + 2)
    return {
        "tok_emb": jax.random.normal(ks[0], (dec_voc_size, d_model), jnp.float32) * 0.02,
        "pos_enc": sinusoidal_positions(max_len, d_model),
        "layers": [init_layer_params(ks[1 + i], d_model, ffn_hidden) for i in range(n_layer)],
        "fc_w": jax.random.normal(ks[-1], (d_model, dec_voc_size), jnp.float32) * 0.02,
        "fc_b": jnp.zeros((dec_voc_size,), jnp.float32),
    }


# -----------------------------------------------------------------------------
# Main
# -----------------------------------------------------------------------------
if __name__ == "__main__":
    # small shapes consistent with the module's forward
    dec_voc_size = 50
    max_len = 16
    d_model = 32
    n_head = 4
    ffn_hidden = 64
    n_layer = 2
    B = 2
    S_dec = 8      # decoder sequence length
    S_enc = 8      # encoder sequence length

    root = jax.random.PRNGKey(0)
    k_param, k_ids, k_enc = jax.random.split(root, 3)

    params = init_decoder_params(k_param, dec_voc_size, max_len, d_model,
                                 ffn_hidden, n_layer)

    dec_ids = jax.random.randint(k_ids, (B, S_dec), 0, dec_voc_size)       # token ids
    enc_out = jax.random.normal(k_enc, (B, S_enc, d_model), jnp.float32)   # encoder memory

    # t_mask: causal mask for self-attention  (B, 1, S_dec, S_dec), 1 = keep
    causal = jnp.tril(jnp.ones((S_dec, S_dec), jnp.float32))
    t_mask = jnp.broadcast_to(causal, (B, 1, S_dec, S_dec))
    # s_mask: source padding mask for cross-attention (B, 1, S_dec, S_enc), all keep
    s_mask = jnp.ones((B, 1, S_dec, S_enc), jnp.float32)

    fwd = jax.jit(functools.partial(decoder_forward, n_head=n_head))
    logits = fwd(params, dec_ids, enc_out, t_mask, s_mask)
    jax.block_until_ready(logits)

    assert logits.shape == (B, S_dec, dec_voc_size)
    assert bool(jnp.all(jnp.isfinite(logits)))
    print("KERNEL_OK")
</pallas_src>

<mosaic_0001>
module attributes {stable_mosaic.version = 11 : i64} {
  func.func @_matmul_kernel(%arg0: i32, %arg1: i32, %arg2: i32, %arg3: memref<16x128xf32, #tpu.memory_space<vmem>>, %arg4: memref<128x128xf32, #tpu.memory_space<vmem>>, %arg5: memref<1x128xf32, #tpu.memory_space<vmem>>, %arg6: memref<16x128xf32, #tpu.memory_space<vmem>>, %arg7: memref<16x128xf32, #tpu.memory_space<vmem>>) attributes {dimension_semantics = [#tpu.dimension_semantics<parallel>, #tpu.dimension_semantics<parallel>, #tpu.dimension_semantics<arbitrary>], iteration_bounds = array<i64: 1, 1, 1>, scalar_prefetch = 0 : i64, scratch_operands = 1 : i64, tpu.core_type = #tpu.core_type<tc>, window_params = [{transform_indices = @transform_0, window_bounds = array<i64: 16, 128>}, {transform_indices = @transform_1, window_bounds = array<i64: 128, 128>}, {transform_indices = @transform_2, window_bounds = array<i64: 1, 128>}, {transform_indices = @transform_3, window_bounds = array<i64: 16, 128>}]} {
    %c0_i32 = arith.constant 0 : i32
    %0 = arith.cmpi eq, %arg2, %c0_i32 : i32
    %1 = arith.extui %0 : i1 to i32
    %c0_i32_0 = arith.constant 0 : i32
    %2 = arith.cmpi ne, %1, %c0_i32_0 : i32
    scf.if %2 {
      %cst_10 = arith.constant 0.000000e+00 : f32
      %14 = vector.broadcast %cst_10 : f32 to vector<16x128xf32>
      %c0_11 = arith.constant 0 : index
      %c0_12 = arith.constant 0 : index
      %15 = vector.load %arg7[%c0_11, %c0_12] : memref<16x128xf32, #tpu.memory_space<vmem>>, vector<16x128xf32>
      tpu.vector_store %arg7[%c0_11, %c0_12], %14 {strides = array<i32>} : memref<16x128xf32, #tpu.memory_space<vmem>>, vector<16x128xf32>,
    } else {
    }
    %c0 = arith.constant 0 : index
    %c0_1 = arith.constant 0 : index
    %3 = vector.load %arg7[%c0, %c0_1] : memref<16x128xf32, #tpu.memory_space<vmem>>, vector<16x128xf32>
    %c0_2 = arith.constant 0 : index
    %c0_3 = arith.constant 0 : index
    %4 = vector.load %arg3[%c0_2, %c0_3] : memref<16x128xf32, #tpu.memory_space<vmem>>, vector<16x128xf32>
    %5 = arith.truncf %4 : vector<16x128xf32> to vector<16x128xbf16>
    %c0_4 = arith.constant 0 : index
    %c0_5 = arith.constant 0 : index
    %6 = vector.load %arg4[%c0_4, %c0_5] : memref<128x128xf32, #tpu.memory_space<vmem>>, vector<128x128xf32>
    %7 = arith.truncf %6 : vector<128x128xf32> to vector<128x128xbf16>
    %cst = arith.constant dense<0.000000e+00> : vector<16x128xf32>
    %8 = tpu.matmul %5, %7, %cst {dimension_numbers = #tpu.dot_dimension_numbers<[1], [0], [0], [1], [0, 0, 1, 1], [], []>} : vector<16x128xbf16>, vector<128x128xbf16>, vector<16x128xf32> -> vector<16x128xf32>
    %9 = arith.addf %3, %8 : vector<16x128xf32>
    %c0_6 = arith.constant 0 : index
    %c0_7 = arith.constant 0 : index
    %10 = vector.load %arg7[%c0_6, %c0_7] : memref<16x128xf32, #tpu.memory_space<vmem>>, vector<16x128xf32>
    tpu.vector_store %arg7[%c0_6, %c0_7], %9 {strides = array<i32>} : memref<16x128xf32, #tpu.memory_space<vmem>>, vector<16x128xf32>,
    %c0_i32_8 = arith.constant 0 : i32
    %11 = arith.cmpi eq, %arg2, %c0_i32_8 : i32
    %12 = arith.extui %11 : i1 to i32
    %c0_i32_9 = arith.constant 0 : i32
    %13 = arith.cmpi ne, %12, %c0_i32_9 : i32
    scf.if %13 {
      %c0_10 = arith.constant 0 : index
      %c0_11 = arith.constant 0 : index
      %14 = vector.load %arg7[%c0_10, %c0_11] : memref<16x128xf32, #tpu.memory_space<vmem>>, vector<16x128xf32>
      %c0_12 = arith.constant 0 : index
      %c0_13 = arith.constant 0 : index
      %15 = vector.load %arg5[%c0_12, %c0_13] : memref<1x128xf32, #tpu.memory_space<vmem>>, vector<1x128xf32>
      %16 = vector.broadcast %15 : vector<1x128xf32> to vector<16x128xf32>
      %17 = arith.addf %14, %16 : vector<16x128xf32>
      %c0_14 = arith.constant 0 : index
      %c0_15 = arith.constant 0 : index
      %18 = vector.load %arg6[%c0_14, %c0_15] : memref<16x128xf32, #tpu.memory_space<vmem>>, vector<16x128xf32>
      tpu.vector_store %arg6[%c0_14, %c0_15], %17 {strides = array<i32>} : memref<16x128xf32, #tpu.memory_space<vmem>>, vector<16x128xf32>,
    } else {
    }
    return
  }
  func.func @transform_0(%arg0: i32, %arg1: i32, %arg2: i32) -> (i32, i32) {
    %c0_i32 = arith.constant 0 : i32
    return %arg0, %arg2 : i32, i32
  }
  func.func @transform_1(%arg0: i32, %arg1: i32, %arg2: i32) -> (i32, i32) {
    %c0_i32 = arith.constant 0 : i32
    return %arg2, %arg1 : i32, i32
  }
  func.func @transform_2(%arg0: i32, %arg1: i32, %arg2: i32) -> (i32, i32) {
    %c0_i32 = arith.constant 0 : i32
    %c0_i32_0 = arith.constant 0 : i32
    return %c0_i32, %arg1 : i32, i32
  }
  func.func @transform_3(%arg0: i32, %arg1: i32, %arg2: i32) -> (i32, i32) {
    %c0_i32 = arith.constant 0 : i32
    return %arg0, %arg1 : i32, i32
  }
}

module attributes {stable_mosaic.version = 11 : i64} {
  func.func @_attention_kernel(%arg0: i32, %arg1: memref<1x8x32xf32, #tpu.memory_space<vmem>>, %arg2: memref<1x8x32xf32, #tpu.memory_space<vmem>>, %arg3: memref<1x8x32xf32, #tpu.memory_space<vmem>>, %arg4: memref<1x1x8x8xf32, #tpu.memory_space<vmem>>, %arg5: memref<1x8x32xf32, #tpu.memory_space<vmem>>) attributes {dimension_semantics = [#tpu.dimension_semantics<parallel>], iteration_bounds = array<i64: 2>, scalar_prefetch = 0 : i64, scratch_operands = 0 : i64, tpu.core_type = #tpu.core_type<tc>, window_params = [{transform_indices = @transform_0, window_bounds = array<i64: 1, 8, 32>}, {transform_indices = @transform_1, window_bounds = array<i64: 1, 8, 32>}, {transform_indices = @transform_2, window_bounds = array<i64: 1, 8, 32>}, {transform_indices = @transform_3, window_bounds = array<i64: 1, 1, 8, 8>}, {transform_indices = @transform_4, window_bounds = array<i64: 1, 8, 32>}]} {
    %c0 = arith.constant 0 : index
    %c0_0 = arith.constant 0 : index
    %c0_1 = arith.constant 0 : index
    %0 = vector.load %arg1[%c0, %c0_0, %c0_1] : memref<1x8x32xf32, #tpu.memory_space<vmem>>, vector<1x8x32xf32>
    %1 = vector.shape_cast %0 : vector<1x8x32xf32> to vector<8x32xf32>
    %c0_2 = arith.constant 0 : index
    %c0_3 = arith.constant 0 : index
    %c0_4 = arith.constant 0 : index
    %2 = vector.load %arg2[%c0_2, %c0_3, %c0_4] : memref<1x8x32xf32, #tpu.memory_space<vmem>>, vector<1x8x32xf32>
    %3 = vector.shape_cast %2 : vector<1x8x32xf32> to vector<8x32xf32>
    %c0_5 = arith.constant 0 : index
    %c0_6 = arith.constant 0 : index
    %c0_7 = arith.constant 0 : index
    %4 = vector.load %arg3[%c0_5, %c0_6, %c0_7] : memref<1x8x32xf32, #tpu.memory_space<vmem>>, vector<1x8x32xf32>
    %5 = vector.shape_cast %4 : vector<1x8x32xf32> to vector<8x32xf32>
    %c0_8 = arith.constant 0 : index
    %c0_9 = arith.constant 0 : index
    %c0_10 = arith.constant 0 : index
    %c0_11 = arith.constant 0 : index
    %6 = vector.load %arg4[%c0_8, %c0_9, %c0_10, %c0_11] : memref<1x1x8x8xf32, #tpu.memory_space<vmem>>, vector<1x1x8x8xf32>
    %7 = vector.shape_cast %6 : vector<1x1x8x8xf32> to vector<8x8xf32>
    %8 = vector.extract_strided_slice %1 {offsets = [0, 0], sizes = [8, 8], strides = [1, 1]} : vector<8x32xf32> to vector<8x8xf32>
    %9 = arith.truncf %8 : vector<8x8xf32> to vector<8x8xbf16>
    %10 = vector.extract_strided_slice %3 {offsets = [0, 0], sizes = [8, 8], strides = [1, 1]} : vector<8x32xf32> to vector<8x8xf32>
    %11 = arith.truncf %10 : vector<8x8xf32> to vector<8x8xbf16>
    %12 = vector.extract_strided_slice %5 {offsets = [0, 0], sizes = [8, 8], strides = [1, 1]} : vector<8x32xf32> to vector<8x8xf32>
    %13 = arith.truncf %12 : vector<8x8xf32> to vector<8x8xbf16>
    %cst = arith.constant dense<0.000000e+00> : vector<8x8xf32>
    %14 = tpu.matmul %9, %11, %cst {dimension_numbers = #tpu.dot_dimension_numbers<[1], [1], [0], [0], [0, 0, 1, 0], [], []>} : vector<8x8xbf16>, vector<8x8xbf16>, vector<8x8xf32> -> vector<8x8xf32>
    %cst_12 = arith.constant 0.353553385 : f32
    %15 = vector.broadcast %cst_12 : f32 to vector<8x8xf32>
    %16 = arith.mulf %14, %15 : vector<8x8xf32>
    %cst_13 = arith.constant 0.000000e+00 : f32
    %17 = vector.broadcast %cst_13 : f32 to vector<8x8xf32>
    %18 = arith.cmpf ogt, %7, %17 : vector<8x8xf32>
    %cst_14 = arith.constant -1.000000e+04 : f32
    %19 = vector.broadcast %cst_14 : f32 to vector<8x8xf32>
    %20 = arith.select %18, %16, %19 : vector<8x8xi1>, vector<8x8xf32>
    %cst_15 = arith.constant dense<0xFF800000> : vector<8xf32>
    %21 = vector.multi_reduction <maximumf>, %20, %cst_15 [1] : vector<8x8xf32> to vector<8xf32>
    %22 = vector.shape_cast %21 : vector<8xf32> to vector<8x1xf32>
    %23 = vector.broadcast %22 : vector<8x1xf32> to vector<8x8xf32>
    %24 = arith.subf %20, %23 : vector<8x8xf32>
    %25 = math.exp %24 : vector<8x8xf32>
    %cst_16 = arith.constant dense<0.000000e+00> : vector<8xf32>
    %26 = vector.multi_reduction <add>, %25, %cst_16 [1] : vector<8x8xf32> to vector<8xf32>
    %27 = vector.shape_cast %26 : vector<8xf32> to vector<8x1xf32>
    %28 = tpu.reciprocal %27 {approx = true} : vector<8x1xf32> -> vector<8x1xf32>
    %29 = vector.broadcast %28 : vector<8x1xf32> to vector<8x8xf32>
    %30 = arith.mulf %25, %29 : vector<8x8xf32>
    %31 = arith.truncf %30 : vector<8x8xf32> to vector<8x8xbf16>
    %cst_17 = arith.constant dense<0.000000e+00> : vector<8x8xf32>
    %32 = tpu.matmul %31, %13, %cst_17 {dimension_numbers = #tpu.dot_dimension_numbers<[1], [0], [0], [1], [0, 0, 1, 1], [], []>} : vector<8x8xbf16>, vector<8x8xbf16>, vector<8x8xf32> -> vector<8x8xf32>
    %33 = vector.extract_strided_slice %1 {offsets = [0, 8], sizes = [8, 8], strides = [1, 1]} : vector<8x32xf32> to vector<8x8xf32>
    %34 = arith.truncf %33 : vector<8x8xf32> to vector<8x8xbf16>
    %35 = vector.extract_strided_slice %3 {offsets = [0, 8], sizes = [8, 8], strides = [1, 1]} : vector<8x32xf32> to vector<8x8xf32>
    %36 = arith.truncf %35 : vector<8x8xf32> to vector<8x8xbf16>
    %37 = vector.extract_strided_slice %5 {offsets = [0, 8], sizes = [8, 8], strides = [1, 1]} : vector<8x32xf32> to vector<8x8xf32>
    %38 = arith.truncf %37 : vector<8x8xf32> to vector<8x8xbf16>
    %cst_18 = arith.constant dense<0.000000e+00> : vector<8x8xf32>
    %39 = tpu.matmul %34, %36, %cst_18 {dimension_numbers = #tpu.dot_dimension_numbers<[1], [1], [0], [0], [0, 0, 1, 0], [], []>} : vector<8x8xbf16>, vector<8x8xbf16>, vector<8x8xf32> -> vector<8x8xf32>
    %cst_19 = arith.constant 0.353553385 : f32
    %40 = vector.broadcast %cst_19 : f32 to vector<8x8xf32>
    %41 = arith.mulf %39, %40 : vector<8x8xf32>
    %cst_20 = arith.constant 0.000000e+00 : f32
    %42 = vector.broadcast %cst_20 : f32 to vector<8x8xf32>
    %43 = arith.cmpf ogt, %7, %42 : vector<8x8xf32>
    %cst_21 = arith.constant -1.000000e+04 : f32
    %44 = vector.broadcast %cst_21 : f32 to vector<8x8xf32>
    %45 = arith.select %43, %41, %44 : vector<8x8xi1>, vector<8x8xf32>
    %cst_22 = arith.constant dense<0xFF800000> : vector<8xf32>
    %46 = vector.multi_reduction <maximumf>, %45, %cst_22 [1] : vector<8x8xf32> to vector<8xf32>
    %47 = vector.shape_cast %46 : vector<8xf32> to vector<8x1xf32>
    %48 = vector.broadcast %47 : vector<8x1xf32> to vector<8x8xf32>
    %49 = arith.subf %45, %48 : vector<8x8xf32>
    %50 = math.exp %49 : vector<8x8xf32>
    %cst_23 = arith.constant dense<0.000000e+00> : vector<8xf32>
    %51 = vector.multi_reduction <add>, %50, %cst_23 [1] : vector<8x8xf32> to vector<8xf32>
    %52 = vector.shape_cast %51 : vector<8xf32> to vector<8x1xf32>
    %53 = tpu.reciprocal %52 {approx = true} : vector<8x1xf32> -> vector<8x1xf32>
    %54 = vector.broadcast %53 : vector<8x1xf32> to vector<8x8xf32>
    %55 = arith.mulf %50, %54 : vector<8x8xf32>
    %56 = arith.truncf %55 : vector<8x8xf32> to vector<8x8xbf16>
    %cst_24 = arith.constant dense<0.000000e+00> : vector<8x8xf32>
    %57 = tpu.matmul %56, %38, %cst_24 {dimension_numbers = #tpu.dot_dimension_numbers<[1], [0], [0], [1], [0, 0, 1, 1], [], []>} : vector<8x8xbf16>, vector<8x8xbf16>, vector<8x8xf32> -> vector<8x8xf32>
    %58 = vector.extract_strided_slice %1 {offsets = [0, 16], sizes = [8, 8], strides = [1, 1]} : vector<8x32xf32> to vector<8x8xf32>
    %59 = arith.truncf %58 : vector<8x8xf32> to vector<8x8xbf16>
    %60 = vector.extract_strided_slice %3 {offsets = [0, 16], sizes = [8, 8], strides = [1, 1]} : vector<8x32xf32> to vector<8x8xf32>
    %61 = arith.truncf %60 : vector<8x8xf32> to vector<8x8xbf16>
    %62 = vector.extract_strided_slice %5 {offsets = [0, 16], sizes = [8, 8], strides = [1, 1]} : vector<8x32xf32> to vector<8x8xf32>
    %63 = arith.truncf %62 : vector<8x8xf32> to vector<8x8xbf16>
    %cst_25 = arith.constant dense<0.000000e+00> : vector<8x8xf32>
    %64 = tpu.matmul %59, %61, %cst_25 {dimension_numbers = #tpu.dot_dimension_numbers<[1], [1], [0], [0], [0, 0, 1, 0], [], []>} : vector<8x8xbf16>, vector<8x8xbf16>, vector<8x8xf32> -> vector<8x8xf32>
    %cst_26 = arith.constant 0.353553385 : f32
    %65 = vector.broadcast %cst_26 : f32 to vector<8x8xf32>
    %66 = arith.mulf %64, %65 : vector<8x8xf32>
    %cst_27 = arith.constant 0.000000e+00 : f32
    %67 = vector.broadcast %cst_27 : f32 to vector<8x8xf32>
    %68 = arith.cmpf ogt, %7, %67 : vector<8x8xf32>
    %cst_28 = arith.constant -1.000000e+04 : f32
    %69 = vector.broadcast %cst_28 : f32 to vector<8x8xf32>
    %70 = arith.select %68, %66, %69 : vector<8x8xi1>, vector<8x8xf32>
    %cst_29 = arith.constant dense<0xFF800000> : vector<8xf32>
    %71 = vector.multi_reduction <maximumf>, %70, %cst_29 [1] : vector<8x8xf32> to vector<8xf32>
    %72 = vector.shape_cast %71 : vector<8xf32> to vector<8x1xf32>
    %73 = vector.broadcast %72 : vector<8x1xf32> to vector<8x8xf32>
    %74 = arith.subf %70, %73 : vector<8x8xf32>
    %75 = math.exp %74 : vector<8x8xf32>
    %cst_30 = arith.constant dense<0.000000e+00> : vector<8xf32>
    %76 = vector.multi_reduction <add>, %75, %cst_30 [1] : vector<8x8xf32> to vector<8xf32>
    %77 = vector.shape_cast %76 : vector<8xf32> to vector<8x1xf32>
    %78 = tpu.reciprocal %77 {approx = true} : vector<8x1xf32> -> vector<8x1xf32>
    %79 = vector.broadcast %78 : vector<8x1xf32> to vector<8x8xf32>
    %80 = arith.mulf %75, %79 : vector<8x8xf32>
    %81 = arith.truncf %80 : vector<8x8xf32> to vector<8x8xbf16>
    %cst_31 = arith.constant dense<0.000000e+00> : vector<8x8xf32>
    %82 = tpu.matmul %81, %63, %cst_31 {dimension_numbers = #tpu.dot_dimension_numbers<[1], [0], [0], [1], [0, 0, 1, 1], [], []>} : vector<8x8xbf16>, vector<8x8xbf16>, vector<8x8xf32> -> vector<8x8xf32>
    %83 = vector.extract_strided_slice %1 {offsets = [0, 24], sizes = [8, 8], strides = [1, 1]} : vector<8x32xf32> to vector<8x8xf32>
    %84 = arith.truncf %83 : vector<8x8xf32> to vector<8x8xbf16>
    %85 = vector.extract_strided_slice %3 {offsets = [0, 24], sizes = [8, 8], strides = [1, 1]} : vector<8x32xf32> to vector<8x8xf32>
    %86 = arith.truncf %85 : vector<8x8xf32> to vector<8x8xbf16>
    %87 = vector.extract_strided_slice %5 {offsets = [0, 24], sizes = [8, 8], strides = [1, 1]} : vector<8x32xf32> to vector<8x8xf32>
    %88 = arith.truncf %87 : vector<8x8xf32> to vector<8x8xbf16>
    %cst_32 = arith.constant dense<0.000000e+00> : vector<8x8xf32>
    %89 = tpu.matmul %84, %86, %cst_32 {dimension_numbers = #tpu.dot_dimension_numbers<[1], [1], [0], [0], [0, 0, 1, 0], [], []>} : vector<8x8xbf16>, vector<8x8xbf16>, vector<8x8xf32> -> vector<8x8xf32>
    %cst_33 = arith.constant 0.353553385 : f32
    %90 = vector.broadcast %cst_33 : f32 to vector<8x8xf32>
    %91 = arith.mulf %89, %90 : vector<8x8xf32>
    %cst_34 = arith.constant 0.000000e+00 : f32
    %92 = vector.broadcast %cst_34 : f32 to vector<8x8xf32>
    %93 = arith.cmpf ogt, %7, %92 : vector<8x8xf32>
    %cst_35 = arith.constant -1.000000e+04 : f32
    %94 = vector.broadcast %cst_35 : f32 to vector<8x8xf32>
    %95 = arith.select %93, %91, %94 : vector<8x8xi1>, vector<8x8xf32>
    %cst_36 = arith.constant dense<0xFF800000> : vector<8xf32>
    %96 = vector.multi_reduction <maximumf>, %95, %cst_36 [1] : vector<8x8xf32> to vector<8xf32>
    %97 = vector.shape_cast %96 : vector<8xf32> to vector<8x1xf32>
    %98 = vector.broadcast %97 : vector<8x1xf32> to vector<8x8xf32>
    %99 = arith.subf %95, %98 : vector<8x8xf32>
    %100 = math.exp %99 : vector<8x8xf32>
    %cst_37 = arith.constant dense<0.000000e+00> : vector<8xf32>
    %101 = vector.multi_reduction <add>, %100, %cst_37 [1] : vector<8x8xf32> to vector<8xf32>
    %102 = vector.shape_cast %101 : vector<8xf32> to vector<8x1xf32>
    %103 = tpu.reciprocal %102 {approx = true} : vector<8x1xf32> -> vector<8x1xf32>
    %104 = vector.broadcast %103 : vector<8x1xf32> to vector<8x8xf32>
    %105 = arith.mulf %100, %104 : vector<8x8xf32>
    %106 = arith.truncf %105 : vector<8x8xf32> to vector<8x8xbf16>
    %cst_38 = arith.constant dense<0.000000e+00> : vector<8x8xf32>
    %107 = tpu.matmul %106, %88, %cst_38 {dimension_numbers = #tpu.dot_dimension_numbers<[1], [0], [0], [1], [0, 0, 1, 1], [], []>} : vector<8x8xbf16>, vector<8x8xbf16>, vector<8x8xf32> -> vector<8x8xf32>
    %108 = tpu.concatenate %32, %57, %82, %107 in 1 : vector<8x8xf32>, vector<8x8xf32>, vector<8x8xf32>, vector<8x8xf32> -> vector<8x32xf32>
    %c0_39 = arith.constant 0 : index
    %c0_40 = arith.constant 0 : index
    %c0_41 = arith.constant 0 : index
    %109 = vector.load %arg5[%c0_39, %c0_40, %c0_41] : memref<1x8x32xf32, #tpu.memory_space<vmem>>, vector<1x8x32xf32>
    %110 = vector.shape_cast %109 : vector<1x8x32xf32> to vector<8x32xf32>
    %111 = vector.shape_cast %108 : vector<8x32xf32> to vector<1x8x32xf32>
    tpu.vector_store %arg5[%c0_39, %c0_40, %c0_41], %111 {strides = array<i32>} : memref<1x8x32xf32, #tpu.memory_space<vmem>>, vector<1x8x32xf32>,
    return
  }
  func.func @transform_0(%arg0: i32) -> (i32, i32, i32) {
    %c0_i32 = arith.constant 0 : i32
    %c0_i32_0 = arith.constant 0 : i32
    %c0_i32_1 = arith.constant 0 : i32
    return %arg0, %c0_i32, %c0_i32_0 : i32, i32, i32
  }
  func.func @transform_1(%arg0: i32) -> (i32, i32, i32) {
    %c0_i32 = arith.constant 0 : i32
    %c0_i32_0 = arith.constant 0 : i32
    %c0_i32_1 = arith.constant 0 : i32
    return %arg0, %c0_i32, %c0_i32_0 : i32, i32, i32
  }
  func.func @transform_2(%arg0: i32) -> (i32, i32, i32) {
    %c0_i32 = arith.constant 0 : i32
    %c0_i32_0 = arith.constant 0 : i32
    %c0_i32_1 = arith.constant 0 : i32
    return %arg0, %c0_i32, %c0_i32_0 : i32, i32, i32
  }
  func.func @transform_3(%arg0: i32) -> (i32, i32, i32, i32) {
    %c0_i32 = arith.constant 0 : i32
    %c0_i32_0 = arith.constant 0 : i32
    %c0_i32_1 = arith.constant 0 : i32
    %c0_i32_2 = arith.constant 0 : i32
    return %arg0, %c0_i32, %c0_i32_0, %c0_i32_1 : i32, i32, i32, i32
  }
  func.func @transform_4(%arg0: i32) -> (i32, i32, i32) {
    %c0_i32 = arith.constant 0 : i32
    %c0_i32_0 = arith.constant 0 : i32
    %c0_i32_1 = arith.constant 0 : i32
    return %arg0, %c0_i32, %c0_i32_0 : i32, i32, i32
  }
}

module attributes {stable_mosaic.version = 11 : i64} {
  func.func @_layernorm_res_kernel(%arg0: i32, %arg1: memref<16x32xf32, #tpu.memory_space<vmem>>, %arg2: memref<16x32xf32, #tpu.memory_space<vmem>>, %arg3: memref<1x32xf32, #tpu.memory_space<vmem>>, %arg4: memref<1x32xf32, #tpu.memory_space<vmem>>, %arg5: memref<16x32xf32, #tpu.memory_space<vmem>>) attributes {dimension_semantics = [#tpu.dimension_semantics<parallel>], iteration_bounds = array<i64: 1>, scalar_prefetch = 0 : i64, scratch_operands = 0 : i64, tpu.core_type = #tpu.core_type<tc>, window_params = [{transform_indices = @transform_0, window_bounds = array<i64: 16, 32>}, {transform_indices = @transform_1, window_bounds = array<i64: 16, 32>}, {pipeline_mode = #tpu.pipeline_mode<synchronous>, transform_indices = @transform_2, window_bounds = array<i64: 1, 32>}, {pipeline_mode = #tpu.pipeline_mode<synchronous>, transform_indices = @transform_3, window_bounds = array<i64: 1, 32>}, {transform_indices = @transform_4, window_bounds = array<i64: 16, 32>}]} {
    %c0 = arith.constant 0 : index
    %c0_0 = arith.constant 0 : index
    %0 = vector.load %arg1[%c0, %c0_0] : memref<16x32xf32, #tpu.memory_space<vmem>>, vector<16x32xf32>
    %c0_1 = arith.constant 0 : index
    %c0_2 = arith.constant 0 : index
    %1 = vector.load %arg2[%c0_1, %c0_2] : memref<16x32xf32, #tpu.memory_space<vmem>>, vector<16x32xf32>
    %2 = arith.addf %0, %1 : vector<16x32xf32>
    %cst = arith.constant dense<0.000000e+00> : vector<16xf32>
    %3 = vector.multi_reduction <add>, %2, %cst [1] : vector<16x32xf32> to vector<16xf32>
    %4 = vector.shape_cast %3 : vector<16xf32> to vector<16x1xf32>
    %cst_3 = arith.constant 3.200000e+01 : f32
    %5 = vector.broadcast %cst_3 : f32 to vector<16x1xf32>
    %6 = arith.divf %4, %5 : vector<16x1xf32>
    %7 = vector.broadcast %6 : vector<16x1xf32> to vector<16x32xf32>
    %8 = arith.subf %2, %7 : vector<16x32xf32>
    %9 = vector.broadcast %6 : vector<16x1xf32> to vector<16x32xf32>
    %10 = arith.subf %2, %9 : vector<16x32xf32>
    %11 = arith.mulf %8, %10 : vector<16x32xf32>
    %cst_4 = arith.constant dense<0.000000e+00> : vector<16xf32>
    %12 = vector.multi_reduction <add>, %11, %cst_4 [1] : vector<16x32xf32> to vector<16xf32>
    %13 = vector.shape_cast %12 : vector<16xf32> to vector<16x1xf32>
    %cst_5 = arith.constant 3.200000e+01 : f32
    %14 = vector.broadcast %cst_5 : f32 to vector<16x1xf32>
    %15 = arith.divf %13, %14 : vector<16x1xf32>
    %16 = vector.broadcast %6 : vector<16x1xf32> to vector<16x32xf32>
    %17 = arith.subf %2, %16 : vector<16x32xf32>
    %cst_6 = arith.constant 9.99999974E-6 : f32
    %18 = vector.broadcast %cst_6 : f32 to vector<16x1xf32>
    %19 = arith.addf %15, %18 : vector<16x1xf32>
    %20 = math.rsqrt %19 : vector<16x1xf32>
    %21 = vector.broadcast %20 : vector<16x1xf32> to vector<16x32xf32>
    %22 = arith.mulf %17, %21 : vector<16x32xf32>
    %c0_7 = arith.constant 0 : index
    %c0_8 = arith.constant 0 : index
    %23 = vector.load %arg3[%c0_7, %c0_8] : memref<1x32xf32, #tpu.memory_space<vmem>>, vector<1x32xf32>
    %24 = vector.broadcast %23 : vector<1x32xf32> to vector<16x32xf32>
    %25 = arith.mulf %22, %24 : vector<16x32xf32>
    %c0_9 = arith.constant 0 : index
    %c0_10 = arith.constant 0 : index
    %26 = vector.load %arg4[%c0_9, %c0_10] : memref<1x32xf32, #tpu.memory_space<vmem>>, vector<1x32xf32>
    %27 = vector.broadcast %26 : vector<1x32xf32> to vector<16x32xf32>
    %28 = arith.addf %25, %27 : vector<16x32xf32>
    %c0_11 = arith.constant 0 : index
    %c0_12 = arith.constant 0 : index
    %29 = vector.load %arg5[%c0_11, %c0_12] : memref<16x32xf32, #tpu.memory_space<vmem>>, vector<16x32xf32>
    tpu.vector_store %arg5[%c0_11, %c0_12], %28 {strides = array<i32>} : memref<16x32xf32, #tpu.memory_space<vmem>>, vector<16x32xf32>,
    return
  }
  func.func @transform_0(%arg0: i32) -> (i32, i32) {
    %c0_i32 = arith.constant 0 : i32
    %c0_i32_0 = arith.constant 0 : i32
    return %arg0, %c0_i32 : i32, i32
  }
  func.func @transform_1(%arg0: i32) -> (i32, i32) {
    %c0_i32 = arith.constant 0 : i32
    %c0_i32_0 = arith.constant 0 : i32
    return %arg0, %c0_i32 : i32, i32
  }
  func.func @transform_2(%arg0: i32) -> (i32, i32) {
    %c0_i32 = arith.constant 0 : i32
    %c0_i32_0 = arith.constant 0 : i32
    %c0_i32_1 = arith.constant 0 : i32
    return %c0_i32, %c0_i32_0 : i32, i32
  }
  func.func @transform_3(%arg0: i32) -> (i32, i32) {
    %c0_i32 = arith.constant 0 : i32
    %c0_i32_0 = arith.constant 0 : i32
    %c0_i32_1 = arith.constant 0 : i32
    return %c0_i32, %c0_i32_0 : i32, i32
  }
  func.func @transform_4(%arg0: i32) -> (i32, i32) {
    %c0_i32 = arith.constant 0 : i32
    %c0_i32_0 = arith.constant 0 : i32
    return %arg0, %c0_i32 : i32, i32
  }
}

module attributes {stable_mosaic.version = 11 : i64} {
  func.func @_matmul_kernel(%arg0: i32, %arg1: i32, %arg2: i32, %arg3: memref<16x128xf32, #tpu.memory_space<vmem>>, %arg4: memref<128x128xf32, #tpu.memory_space<vmem>>, %arg5: memref<1x128xf32, #tpu.memory_space<vmem>>, %arg6: memref<16x128xf32, #tpu.memory_space<vmem>>, %arg7: memref<16x128xf32, #tpu.memory_space<vmem>>) attributes {dimension_semantics = [#tpu.dimension_semantics<parallel>, #tpu.dimension_semantics<parallel>, #tpu.dimension_semantics<arbitrary>], iteration_bounds = array<i64: 1, 1, 1>, scalar_prefetch = 0 : i64, scratch_operands = 1 : i64, tpu.core_type = #tpu.core_type<tc>, window_params = [{transform_indices = @transform_0, window_bounds = array<i64: 16, 128>}, {transform_indices = @transform_1, window_bounds = array<i64: 128, 128>}, {transform_indices = @transform_2, window_bounds = array<i64: 1, 128>}, {transform_indices = @transform_3, window_bounds = array<i64: 16, 128>}]} {
    %c0_i32 = arith.constant 0 : i32
    %0 = arith.cmpi eq, %arg2, %c0_i32 : i32
    %1 = arith.extui %0 : i1 to i32
    %c0_i32_0 = arith.constant 0 : i32
    %2 = arith.cmpi ne, %1, %c0_i32_0 : i32
    scf.if %2 {
      %cst_10 = arith.constant 0.000000e+00 : f32
      %14 = vector.broadcast %cst_10 : f32 to vector<16x128xf32>
      %c0_11 = arith.constant 0 : index
      %c0_12 = arith.constant 0 : index
      %15 = vector.load %arg7[%c0_11, %c0_12] : memref<16x128xf32, #tpu.memory_space<vmem>>, vector<16x128xf32>
      tpu.vector_store %arg7[%c0_11, %c0_12], %14 {strides = array<i32>} : memref<16x128xf32, #tpu.memory_space<vmem>>, vector<16x128xf32>,
    } else {
    }
    %c0 = arith.constant 0 : index
    %c0_1 = arith.constant 0 : index
    %3 = vector.load %arg7[%c0, %c0_1] : memref<16x128xf32, #tpu.memory_space<vmem>>, vector<16x128xf32>
    %c0_2 = arith.constant 0 : index
    %c0_3 = arith.constant 0 : index
    %4 = vector.load %arg3[%c0_2, %c0_3] : memref<16x128xf32, #tpu.memory_space<vmem>>, vector<16x128xf32>
    %5 = arith.truncf %4 : vector<16x128xf32> to vector<16x128xbf16>
    %c0_4 = arith.constant 0 : index
    %c0_5 = arith.constant 0 : index
    %6 = vector.load %arg4[%c0_4, %c0_5] : memref<128x128xf32, #tpu.memory_space<vmem>>, vector<128x128xf32>
    %7 = arith.truncf %6 : vector<128x128xf32> to vector<128x128xbf16>
    %cst = arith.constant dense<0.000000e+00> : vector<16x128xf32>
    %8 = tpu.matmul %5, %7, %cst {dimension_numbers = #tpu.dot_dimension_numbers<[1], [0], [0], [1], [0, 0, 1, 1], [], []>} : vector<16x128xbf16>, vector<128x128xbf16>, vector<16x128xf32> -> vector<16x128xf32>
    %9 = arith.addf %3, %8 : vector<16x128xf32>
    %c0_6 = arith.constant 0 : index
    %c0_7 = arith.constant 0 : index
    %10 = vector.load %arg7[%c0_6, %c0_7] : memref<16x128xf32, #tpu.memory_space<vmem>>, vector<16x128xf32>
    tpu.vector_store %arg7[%c0_6, %c0_7], %9 {strides = array<i32>} : memref<16x128xf32, #tpu.memory_space<vmem>>, vector<16x128xf32>,
    %c0_i32_8 = arith.constant 0 : i32
    %11 = arith.cmpi eq, %arg2, %c0_i32_8 : i32
    %12 = arith.extui %11 : i1 to i32
    %c0_i32_9 = arith.constant 0 : i32
    %13 = arith.cmpi ne, %12, %c0_i32_9 : i32
    scf.if %13 {
      %c0_10 = arith.constant 0 : index
      %c0_11 = arith.constant 0 : index
      %14 = vector.load %arg7[%c0_10, %c0_11] : memref<16x128xf32, #tpu.memory_space<vmem>>, vector<16x128xf32>
      %c0_12 = arith.constant 0 : index
      %c0_13 = arith.constant 0 : index
      %15 = vector.load %arg5[%c0_12, %c0_13] : memref<1x128xf32, #tpu.memory_space<vmem>>, vector<1x128xf32>
      %16 = vector.broadcast %15 : vector<1x128xf32> to vector<16x128xf32>
      %17 = arith.addf %14, %16 : vector<16x128xf32>
      %cst_14 = arith.constant 0.000000e+00 : f32
      %18 = vector.broadcast %cst_14 : f32 to vector<16x128xf32>
      %19 = arith.maximumf %17, %18 : vector<16x128xf32>
      %c0_15 = arith.constant 0 : index
      %c0_16 = arith.constant 0 : index
      %20 = vector.load %arg6[%c0_15, %c0_16] : memref<16x128xf32, #tpu.memory_space<vmem>>, vector<16x128xf32>
      tpu.vector_store %arg6[%c0_15, %c0_16], %19 {strides = array<i32>} : memref<16x128xf32, #tpu.memory_space<vmem>>, vector<16x128xf32>,
    } else {
    }
    return
  }
  func.func @transform_0(%arg0: i32, %arg1: i32, %arg2: i32) -> (i32, i32) {
    %c0_i32 = arith.constant 0 : i32
    return %arg0, %arg2 : i32, i32
  }
  func.func @transform_1(%arg0: i32, %arg1: i32, %arg2: i32) -> (i32, i32) {
    %c0_i32 = arith.constant 0 : i32
    return %arg2, %arg1 : i32, i32
  }
  func.func @transform_2(%arg0: i32, %arg1: i32, %arg2: i32) -> (i32, i32) {
    %c0_i32 = arith.constant 0 : i32
    %c0_i32_0 = arith.constant 0 : i32
    return %c0_i32, %arg1 : i32, i32
  }
  func.func @transform_3(%arg0: i32, %arg1: i32, %arg2: i32) -> (i32, i32) {
    %c0_i32 = arith.constant 0 : i32
    return %arg0, %arg1 : i32, i32
  }
}

</mosaic_0001>

<bundles_post_ra>
// kernel: decoder_forward.28
= control target key start
LH: loop header
LB: loop body
LE: loop exit
PB: predicated region body
PF: predicated region fallthrough
CT: control target
= control target key end

     0   :  { %vm23_vm0 = vcmask 261120   ;;  %s136_s0 = inlined_call_operand.vmem [shape: f32[16,32], index: 0, kind: input, shape index: {}]   ;;  %s137_s1 = inlined_call_operand.vmem [shape: f32[16,32], index: 1, kind: input, shape index: {}]   ;;  %s138_s2 = inlined_call_operand.vmem [shape: f32[1,32], index: 2, kind: input, shape index: {}]   ;;  %s139_s3 = inlined_call_operand.vmem [shape: f32[1,32], index: 3, kind: input, shape index: {}]   ;;  %s140_s4 = inlined_call_operand.vmem [shape: f32[16,32], index: 4, kind: output, shape index: {}]  }
   0x1   :  { %v17_v0 = vld [vmem:[%s136_s0] sm:$0xff]  ;;  %v18_v2 = vld [vmem:[%s136_s0 + $0x8] sm:$0xff] }
   0x2   :  { %v19_v1 = vld [vmem:[%s137_s1] sm:$0xff]  ;;  %v20_v4 = vld [vmem:[%s137_s1 + $0x8] sm:$0xff] }
   0x3   :  { %v21_v3 = vadd.f32 %v19_v1, %v17_v0  ;;  %v22_v5 = vadd.f32 %v20_v4, %v18_v2  ;;  %v75_v25 = vld [vmem:[%s138_s2] ss:$0 sm:$0xff] }
   0x4   :  { %v76_v27 = vld [vmem:[%s139_s3] ss:$0 sm:$0xff] }
   0x5   :  { %v24_v6 = vsel %vm23_vm0, %v21_v3, 0.0  ;;  %v27_v7 = vsel %vm23_vm0, %v22_v5, 0.0 }
   0x6   :  { %25 = vadd.xlane.f32.xlu0 %v24_v6 }
   0xa   :  { %28 = vadd.xlane.f32.xlu0 %v27_v7 }
  0x8f   :  { %v26_v8 = vpop.xlane.xlu0 %25 }
  0x90   :  { %v31_v9 = vmul.f32 0.03125, %v26_v8 }
  0x92   :  { %v33_v10 = vsub.f32 %v21_v3, %v31_v9 }
  0x93   :  { %v29_v11 = vpop.xlane.xlu0 %28 }
  0x94   :  { %v32_v12 = vmul.f32 0.03125, %v29_v11  ;;  %v35_v13 = vmul.f32 %v33_v10, %v33_v10 }
  0x96   :  { %v34_v14 = vsub.f32 %v22_v5, %v32_v12  ;;  %v37_v15 = vsel %vm23_vm0, %v35_v13, 0.0 }
  0x97   :  { %38 = vadd.xlane.f32.xlu1 %v37_v15 }
  0x98   :  { %v36_v16 = vmul.f32 %v34_v14, %v34_v14 }
  0x9a   :  { %v40_v17 = vsel %vm23_vm0, %v36_v16, 0.0 }
  0x9b   :  { %41 = vadd.xlane.f32.xlu1 %v40_v17 }
 0x120   :  { %v39_v18 = vpop.xlane.xlu1 %38 }
 0x121   :  { %v43_v19 = vmul.f32 0.03125, %v39_v18 }
 0x123   :  { %v45_v20 = vadd.f32 1e-05, %v43_v19 }
 0x124   :  { %v42_v21 = vpop.xlane.xlu1 %41 }
 0x125   :  { %77 = vrsqrt.f32 %v45_v20  ;;  %v44_v22 = vmul.f32 0.03125, %v42_v21 }
 0x127   :  { %v46_v23 = vadd.f32 1e-05, %v44_v22 }
 0x129   :  { %79 = vrsqrt.f32 %v46_v23 }
 0x132   :  { %v78_v24 = vpop.eup %77 }
 0x133   :  { %v49_v26 = vmul.f32 %v78_v24, %v33_v10 }
 0x135   :  { %v58_v28 = vmul.f32 %v75_v25, %v49_v26 }
 0x136   :  { %v80_v29 = vpop.eup %79 }
 0x137   :  { %v67_v30 = vadd.f32 %v76_v27, %v58_v28  ;;  %v50_v31 = vmul.f32 %v80_v29, %v34_v14 }
 0x139   :  { %69 = vst.msk [vmem:[%s140_s4] sm:$0xff] %vm23_vm0, %v67_v30  ;;  %v59_v32 = vmul.f32 %v75_v25, %v50_v31 }
 0x13b   :  { %v68_v33 = vadd.f32 %v76_v27, %v59_v32 }
 0x13d   :  { %70 = vst.msk [vmem:[%s140_s4 + $0x8] sm:$0xff] %vm23_vm0, %v68_v33 }

// kernel: decoder_forward.25
= control target key start
LH: loop header
LB: loop body
LE: loop exit
PB: predicated region body
PF: predicated region fallthrough
CT: control target
= control target key end

     0   :  { %v147_v0 = vmov 0.0   ;;  %vm148_vm0 = vmmov 0   ;;  %s232_s1 = inlined_call_operand.vmem [shape: f32[128,128], index: 1, kind: input, shape index: {}]   ;;  %s233_s0 = inlined_call_operand.vmem [shape: f32[16,128], index: 0, kind: input, shape index: {}]   ;;  %s234_s2 = inlined_call_operand.vmem [shape: f32[1,128], index: 2, kind: input, shape index: {}]   ;;  %s235_s3 = inlined_call_operand.vmem [shape: f32[16,128], index: 3, kind: output, shape index: {}]  }
   0x1   :  { %125 = vmatprep.subr.bf16.mxu0 %v147_v0  ;;  %v40_v1 = vld [vmem:[%s232_s1 + $0x70] sm:$0xff]  ;;  %v41_v2 = vld [vmem:[%s232_s1 + $0x78] sm:$0xff]  ;;  %v38_v3 = vld [vmem:[%s232_s1 + $0x60] sm:$0xff]  ;;  %141 = vmatprep.mubr.msk.bf16.mxu0 %vm148_vm0, %v147_v0 }
   0x2   :  { %v49_v4 = vpack.c.bf16 %v41_v2, %v40_v1  ;;  %v39_v5 = vld [vmem:[%s232_s1 + $0x68] sm:$0xff]  ;;  %v36_v7 = vld [vmem:[%s232_s1 + $0x50] sm:$0xff]  ;;  %v37_v8 = vld [vmem:[%s232_s1 + $0x58] sm:$0xff] }
   0x3   :  { %v48_v6 = vpack.c.bf16 %v39_v5, %v38_v3  ;;  %v47_v9 = vpack.c.bf16 %v37_v8, %v36_v7  ;;  %v34_v10 = vld [vmem:[%s232_s1 + $0x40] sm:$0xff]  ;;  %v35_v11 = vld [vmem:[%s232_s1 + $0x48] sm:$0xff]  ;;  %v32_v13 = vld [vmem:[%s232_s1 + $0x30] sm:$0xff] }
   0x4   :  { %126 = vmatpush3.bf16.msra.mxu0 %v49_v4  ;;  %v46_v12 = vpack.c.bf16 %v35_v11, %v34_v10  ;;  %v33_v14 = vld [vmem:[%s232_s1 + $0x38] sm:$0xff]  ;;  %v30_v16 = vld [vmem:[%s232_s1 + $0x20] sm:$0xff]  ;;  %v31_v17 = vld [vmem:[%s232_s1 + $0x28] sm:$0xff] }
   0x5   :  { %127 = vmatprep.subr.bf16.mxu0 %v147_v0  ;;  %v45_v15 = vpack.c.bf16 %v33_v14, %v32_v13  ;;  %v44_v18 = vpack.c.bf16 %v31_v17, %v30_v16  ;;  %v28_v19 = vld [vmem:[%s232_s1 + $0x10] sm:$0xff]  ;;  %v29_v20 = vld [vmem:[%s232_s1 + $0x18] sm:$0xff]  ;;  %v26_v22 = vld [vmem:[%s232_s1] sm:$0xff] }
   0x6   :  { %v43_v21 = vpack.c.bf16 %v29_v20, %v28_v19  ;;  %v27_v23 = vld [vmem:[%s232_s1 + $0x8] sm:$0xff]  ;;  %v23_v25 = vld [vmem:[%s233_s0] sm:$0xff] }
   0x7   :  { %v42_v24 = vpack.c.bf16 %v27_v23, %v26_v22  ;;  %v24_v26 = vld [vmem:[%s233_s0 + $0x8] sm:$0xff]  ;;  %v115_v28 = vld [vmem:[%s234_s2] ss:$0 sm:$0xff] }
   0x8   :  { %128 = vmatpush3.bf16.msra.mxu0 %v48_v6  ;;  %v25_v27 = vpack.c.bf16 %v24_v26, %v23_v25 }
   0x9   :  { %129 = vmatprep.subr.bf16.mxu0 %v147_v0 }
   0xc   :  { %130 = vmatpush3.bf16.msra.mxu0 %v47_v9 }
   0xd   :  { %131 = vmatprep.subr.bf16.mxu0 %v147_v0 }
  0x10   :  { %132 = vmatpush3.bf16.msra.mxu0 %v46_v12 }
  0x11   :  { %133 = vmatprep.subr.bf16.mxu0 %v147_v0 }
  0x14   :  { %134 = vmatpush3.bf16.msra.mxu0 %v45_v15 }
  0x15   :  { %135 = vmatprep.subr.bf16.mxu0 %v147_v0 }
  0x18   :  { %136 = vmatpush3.bf16.msra.mxu0 %v44_v18 }
  0x19   :  { %137 = vmatprep.subr.bf16.mxu0 %v147_v0 }
  0x1c   :  { %138 = vmatpush3.bf16.msra.mxu0 %v43_v21 }
  0x1d   :  { %139 = vmatprep.subr.bf16.mxu0 %v147_v0 }
  0x20   :  { %140 = vmatpush3.bf16.msra.mxu0 %v42_v24 }
  0x23   :  { %142 = vmatmul.mubr.bf16.vlgmr.msra.gmra.mxu0 %v25_v27 }
  0xe3   :  { %v84_v29 = vpop.f32.mrf.mxu0 }
  0xe4   :  { %v107_v30 = vadd.f32 %v115_v28, %v84_v29 }
  0xe5   :  { %v143_v31 = vpop.f32.mrf.mxu0 }
  0xe6   :  { %109 = vst [vmem:[%s235_s3] sm:$0xff] %v107_v30 }
  0xe7   :  { %v87_v32 = vpop.f32.mrf.mxu0 }
  0xe8   :  { %v108_v33 = vadd.f32 %v115_v28, %v87_v32 }
  0xe9   :  { %v144_v34 = vpop.f32.mrf.mxu0 }
  0xea   :  { %110 = vst [vmem:[%s235_s3 + $0x8] sm:$0xff] %v108_v33 }

// kernel: decoder_forward.34
= control target key start
LH: loop header
LB: loop body
LE: loop exit
PB: predicated region body
PF: predicated region fallthrough
CT: control target
= control target key end

     0   :  { %v149_v0 = vmov 0.0   ;;  %vm150_vm0 = vmmov 0   ;;  %s234_s1 = inlined_call_operand.vmem [shape: f32[128,128], index: 1, kind: input, shape index: {}]   ;;  %s235_s0 = inlined_call_operand.vmem [shape: f32[16,128], index: 0, kind: input, shape index: {}]   ;;  %s236_s2 = inlined_call_operand.vmem [shape: f32[1,128], index: 2, kind: input, shape index: {}]   ;;  %s237_s3 = inlined_call_operand.vmem [shape: f32[16,128], index: 3, kind: output, shape index: {}]  }
   0x1   :  { %127 = vmatprep.subr.bf16.mxu0 %v149_v0  ;;  %v40_v1 = vld [vmem:[%s234_s1 + $0x70] sm:$0xff]  ;;  %v41_v2 = vld [vmem:[%s234_s1 + $0x78] sm:$0xff]  ;;  %v38_v3 = vld [vmem:[%s234_s1 + $0x60] sm:$0xff]  ;;  %143 = vmatprep.mubr.msk.bf16.mxu0 %vm150_vm0, %v149_v0 }
   0x2   :  { %v49_v4 = vpack.c.bf16 %v41_v2, %v40_v1  ;;  %v39_v5 = vld [vmem:[%s234_s1 + $0x68] sm:$0xff]  ;;  %v36_v7 = vld [vmem:[%s234_s1 + $0x50] sm:$0xff]  ;;  %v37_v8 = vld [vmem:[%s234_s1 + $0x58] sm:$0xff] }
   0x3   :  { %v48_v6 = vpack.c.bf16 %v39_v5, %v38_v3  ;;  %v47_v9 = vpack.c.bf16 %v37_v8, %v36_v7  ;;  %v34_v10 = vld [vmem:[%s234_s1 + $0x40] sm:$0xff]  ;;  %v35_v11 = vld [vmem:[%s234_s1 + $0x48] sm:$0xff]  ;;  %v32_v13 = vld [vmem:[%s234_s1 + $0x30] sm:$0xff] }
   0x4   :  { %128 = vmatpush3.bf16.msra.mxu0 %v49_v4  ;;  %v46_v12 = vpack.c.bf16 %v35_v11, %v34_v10  ;;  %v33_v14 = vld [vmem:[%s234_s1 + $0x38] sm:$0xff]  ;;  %v30_v16 = vld [vmem:[%s234_s1 + $0x20] sm:$0xff]  ;;  %v31_v17 = vld [vmem:[%s234_s1 + $0x28] sm:$0xff] }
   0x5   :  { %129 = vmatprep.subr.bf16.mxu0 %v149_v0  ;;  %v45_v15 = vpack.c.bf16 %v33_v14, %v32_v13  ;;  %v44_v18 = vpack.c.bf16 %v31_v17, %v30_v16  ;;  %v28_v19 = vld [vmem:[%s234_s1 + $0x10] sm:$0xff]  ;;  %v29_v20 = vld [vmem:[%s234_s1 + $0x18] sm:$0xff]  ;;  %v26_v22 = vld [vmem:[%s234_s1] sm:$0xff] }
   0x6   :  { %v43_v21 = vpack.c.bf16 %v29_v20, %v28_v19  ;;  %v27_v23 = vld [vmem:[%s234_s1 + $0x8] sm:$0xff]  ;;  %v23_v25 = vld [vmem:[%s235_s0] sm:$0xff] }
   0x7   :  { %v42_v24 = vpack.c.bf16 %v27_v23, %v26_v22  ;;  %v24_v26 = vld [vmem:[%s235_s0 + $0x8] sm:$0xff]  ;;  %v117_v28 = vld [vmem:[%s236_s2] ss:$0 sm:$0xff] }
   0x8   :  { %130 = vmatpush3.bf16.msra.mxu0 %v48_v6  ;;  %v25_v27 = vpack.c.bf16 %v24_v26, %v23_v25 }
   0x9   :  { %131 = vmatprep.subr.bf16.mxu0 %v149_v0 }
   0xc   :  { %132 = vmatpush3.bf16.msra.mxu0 %v47_v9 }
   0xd   :  { %133 = vmatprep.subr.bf16.mxu0 %v149_v0 }
  0x10   :  { %134 = vmatpush3.bf16.msra.mxu0 %v46_v12 }
  0x11   :  { %135 = vmatprep.subr.bf16.mxu0 %v149_v0 }
  0x14   :  { %136 = vmatpush3.bf16.msra.mxu0 %v45_v15 }
  0x15   :  { %137 = vmatprep.subr.bf16.mxu0 %v149_v0 }
  0x18   :  { %138 = vmatpush3.bf16.msra.mxu0 %v44_v18 }
  0x19   :  { %139 = vmatprep.subr.bf16.mxu0 %v149_v0 }
  0x1c   :  { %140 = vmatpush3.bf16.msra.mxu0 %v43_v21 }
  0x1d   :  { %141 = vmatprep.subr.bf16.mxu0 %v149_v0 }
  0x20   :  { %142 = vmatpush3.bf16.msra.mxu0 %v42_v24 }
  0x23   :  { %144 = vmatmul.mubr.bf16.vlgmr.msra.gmra.mxu0 %v25_v27 }
  0xe3   :  { %v84_v29 = vpop.f32.mrf.mxu0 }
  0xe4   :  { %v107_v30 = vadd.f32 %v117_v28, %v84_v29 }
  0xe5   :  { %v145_v31 = vpop.f32.mrf.mxu0 }
  0xe6   :  { %v109_v32 = vmax.f32 %v107_v30, 0.0 }
  0xe7   :  { %v87_v33 = vpop.f32.mrf.mxu0 }
  0xe8   :  { %111 = vst [vmem:[%s237_s3] sm:$0xff] %v109_v32  ;;  %v108_v34 = vadd.f32 %v117_v28, %v87_v33 }
  0xe9   :  { %v146_v35 = vpop.f32.mrf.mxu0 }
  0xea   :  { %v110_v36 = vmax.f32 %v108_v34, 0.0 }
  0xec   :  { %112 = vst [vmem:[%s237_s3 + $0x8] sm:$0xff] %v110_v36 }

// kernel: decoder_forward.26
= control target key start
LH: loop header
LB: loop body
LE: loop exit
PB: predicated region body
PF: predicated region fallthrough
CT: control target
= control target key end

     0   :  { %s965_s15 = smov 0   ;;  %s1076_s0 = inlined_call_operand.vmem [shape: f32[2,8,32], index: 0, kind: input, shape index: {}]   ;;  %s1077_s1 = inlined_call_operand.vmem [shape: f32[2,8,32], index: 1, kind: input, shape index: {}]   ;;  %s1078_s2 = inlined_call_operand.vmem [shape: f32[2,8,32], index: 2, kind: input, shape index: {}]   ;;  %s1079_s3 = inlined_call_operand.vmem [shape: f32[2,1,8,8], index: 3, kind: input, shape index: {}]   ;;  %s1080_s4 = inlined_call_operand.vmem [shape: f32[2,8,32], index: 4, kind: output, shape index: {}]  }
   0x1 LB: > { %s808_s16 = sadd.s32 4294967295, %s930_s15   ;;  %p812_p0 = scmp.ge.s32.totalorder %s930_s15, 1  ;;  %s930_s15 = sphi %s965_s15, %s14_s15  }
   0x2   : > { %p188_p1 = scmp.lt.s32.totalorder %s930_s15, 3 }
   0x4   : > { %p189_p2 = pnand %p812_p0, %p188_p1 }
   0x5   : > { %p224_p3 = scmp.lt.s32.totalorder (!%p189_p2), %s808_s16, 1  ;;  %s934_s27 = smov (!%p189_p2), 120  }
   0x6   : > { %192 = sbr.rel (%p189_p2) target bundleno = 1416 (0x588), region = 36  ;;  %s935_s28 = smov (!%p189_p2), 112  }
   0x7   : > { %s936_s29 = smov (!%p189_p2), 104   ;;  %s937_s7 = smov (!%p189_p2), 8  }
   0x8   : > { %s938_s8 = smov (!%p189_p2), 16   ;;  %s939_s9 = smov (!%p189_p2), 24  }
   0xb   : > { %v932_v0 = vmov 0.0   ;;  %vm933_vm0 = vmmov 0   ;;  %s1082_s16 = smov (!%p224_p3, %s808_s16), 1  ;;  %vm252_vm1 = vcmask 64512   ;;  %vm317_vm3 = vcmask 1043456  }
   0xc   : > { %844 = vmatprep.subr.bf16.mxu0 %v932_v0  ;;  %846 = vmatprep.mubr.msk.bf16.mxu0 %vm933_vm0, %v932_v0  ;;  %s979_s17 = sshll.u32 %s1082_s16, 3  ;;  %vm713_vm4 = vcmask 130048   ;;  %vm715_vm5 = vcmask 195584   ;;  %vm717_vm6 = vcmask 261120  }
   0xd   : > { %850 = vmatprep.subr.bf16.mxu1 %v932_v0  ;;  %852 = vmatprep.mubr.msk.bf16.mxu1 %vm933_vm0, %v932_v0  ;;  %s231_s20 = scalar_lea.vmem %s1077_s1, %s979_s17  ;;  %s227_s23 = scalar_lea.vmem %s1076_s0, %s979_s17 }
   0xe   : > { %v246_v1 = vld [vmem:[%s231_s20] sm:$0xff]  ;;  %s239_s26 = scalar_lea.vmem %s1079_s3, %s979_s17  ;;  %s235_s6 = scalar_lea.vmem %s1078_s2, %s979_s17 }
   0xf   : > { %v250_v2 = vpack.c.bf16 %v246_v1, %v246_v1  ;;  %v245_v4 = vld [vmem:[%s227_s23] sm:$0xff]  ;;  %s243_s12 = scalar_lea.vmem %s1080_s4, %s979_s17 }
  0x10   : > { %v249_v5 = vpack.c.bf16 %v245_v4, %v245_v4  ;;  %v998_v6 = vld [vmem:[%s239_s26] sm:$0xff] }
  0x11   : > { %v257_v3 = vsel %vm252_vm1, %v250_v2, 0  ;;  %vm300_vm2 = vcmp.gt.f32.partialorder %v998_v6, 0.0  ;;  %365 = vrot.lane.b32.xlu1 %v250_v2, %s934_s27  ;;  %v247_v19 = vld [vmem:[%s235_s6] sm:$0xff] }
  0x12   : > { %845 = vmatpush3.bf16.xpose.msra.mxu0 %v257_v3  ;;  %v1014_v20 = vpack.c.bf16 %v247_v19, %v247_v19 }
  0x13   : > { %862 = vmatprep.subr.bf16.mxu0 %v932_v0 }
  0x14   : > { %v319_v21 = vsel %vm317_vm3, %v1014_v20, 0 }
  0x15   : > { %362 = vrot.lane.b32.xlu1 %v249_v5, %s934_s27  ;;  %851 = vmatpush3.bf16.msra.mxu1 %v319_v21 }
  0x16   : > { %856 = vmatprep.subr.bf16.mxu1 %v932_v0 }
  0x19   : > { %847 = vmatmul.mubr.msk.bf16.vlgmr.msra.gmra.mxu0 %vm252_vm1, %v249_v5  ;;  %476 = vrot.lane.b32.xlu1 %v249_v5, %s935_s28 }
  0x1a   : > { %864 = vmatprep.mubr.msk.bf16.mxu0 %vm933_vm0, %v932_v0 }
  0x1d   : > { %590 = vrot.lane.b32.xlu1 %v250_v2, %s936_s29 }
  0x21   : > { %588 = vrot.lane.b32.xlu1 %v249_v5, %s936_s29 }
  0x83   : > { %v366_v24 = vpop.permute.xlu1 %365 }
  0x84   : > { %v371_v26 = vsel %vm252_vm1, %v366_v24, 0 }
  0x87   : > { %v363_v28 = vpop.permute.xlu1 %362 }
  0x8b   : > { %v477_v30 = vpop.permute.xlu1 %476 }
  0x8f   : > { %v591_v32 = vpop.permute.xlu1 %590 }
  0x90   : > { %v596_v33 = vsel %vm252_vm1, %v591_v32, 0 }
  0x93   : > { %v589_v34 = vpop.permute.xlu1 %588 }
  0xd9   : > { %v293_v7 = vpop.f32.mrf.mxu0 }
  0xda   : > { %v299_v8 = vmul.f32 0.35355338, %v293_v7 }
  0xdb   : > { %v848_v9 = vpop.f32.mrf.mxu0 }
  0xdc   : > { %v301_v10 = vsel %vm300_vm2, %v299_v8, -10000.0 }
  0xdd   : > { %v296_v11 = vpop.f32.mrf.mxu0  ;;  %v302_v12 = vsel %vm252_vm1, %v301_v10, -inf }
  0xde   : > { %303 = vmax.xlane.f32.xlu0 %v302_v12 }
  0xdf   : > { %v849_v13 = vpop.f32.mrf.mxu0 }
 0x167   : > { %v304_v14 = vpop.xlane.xlu0 %303 }
 0x168   : > { %v305_v15 = vsub.f32 %v301_v10, %v304_v14 }
 0x16a   : > { %v306_v16 = vmul.f32 1.442695, %v305_v15 }
 0x16c   : > { %908 = vpow2.f32 %v306_v16 }
 0x179   : > { %v909_v17 = vpop.eup %908 }
 0x17a   : > { %v308_v18 = vsel %vm252_vm1, %v909_v17, 0.0 }
 0x17b   : > { %309 = vadd.xlane.f32.xlu0 %v308_v18 }
 0x191   : > { %478 = vrot.lane.b32.xlu0 %v250_v2, %s935_s28 }
 0x204   : > { %v310_v22 = vpop.xlane.xlu0 %309 }
 0x205   : > { %910 = vrcp.f32 %v310_v22 }
 0x208   : > { %v479_v29 = vpop.permute.xlu0 %478 }
 0x209   : > { %v484_v31 = vsel %vm252_vm1, %v479_v29, 0 }
 0x212   : > { %v911_v23 = vpop.eup %910 }
 0x213   : > { %v312_v25 = vmul.f32 %v911_v23, %v909_v17 }
 0x215   : > { %v313_v27 = vpack.c.bf16 %v312_v25, %v312_v25 }
 0x217   : > { %853 = vmatmul.mubr.msk.bf16.vlgmr.msra.gmra.mxu1 %vm252_vm1, %v313_v27 }
 0x218   : > { %857 = vmatpush3.bf16.xpose.msra.mxu1 %v371_v26  ;;  %858 = vmatprep.mubr.msk.bf16.mxu1 %vm933_vm0, %v932_v0 }
 0x219   : > { %868 = vmatprep.subr.bf16.mxu1 %v932_v0 }
 0x21f   : > { %859 = vmatmul.mubr.msk.bf16.vlgmr.msra.gmra.mxu1 %vm252_vm1, %v363_v28 }
 0x220   : > { %869 = vmatpush3.bf16.xpose.msra.mxu1 %v484_v31  ;;  %870 = vmatprep.mubr.msk.bf16.mxu1 %vm933_vm0, %v932_v0 }
 0x221   : > { %880 = vmatprep.subr.bf16.mxu1 %v932_v0 }
 0x227   : > { %871 = vmatmul.mubr.msk.bf16.vlgmr.msra.gmra.mxu1 %vm252_vm1, %v477_v30 }
 0x228   : > { %881 = vmatpush3.bf16.xpose.msra.mxu1 %v596_v33  ;;  %882 = vmatprep.mubr.msk.bf16.mxu1 %vm933_vm0, %v932_v0 }
 0x22f   : > { %883 = vmatmul.mubr.msk.bf16.vlgmr.msra.gmra.mxu1 %vm252_vm1, %v589_v34 }
 0x2d7   : > { %v1035_v35 = vpop.f32.mrf.mxu1 }
 0x2d9   : > { %v854_v36 = vpop.f32.mrf.mxu1 }
 0x2db   : > { %v358_v37 = vpop.f32.mrf.mxu1 }
 0x2dd   : > { %v855_v38 = vpop.f32.mrf.mxu1 }
 0x2df   : > { %v407_v39 = vpop.f32.mrf.mxu1 }
 0x2e0   : > { %v413_v40 = vmul.f32 0.35355338, %v407_v39 }
 0x2e1   : > { %v860_v41 = vpop.f32.mrf.mxu1 }
 0x2e2   : > { %v414_v42 = vsel %vm300_vm2, %v413_v40, -10000.0 }
 0x2e3   : > { %v410_v43 = vpop.f32.mrf.mxu1  ;;  %v415_v44 = vsel %vm252_vm1, %v414_v42, -inf }
 0x2e4   : > { %416 = vmax.xlane.f32.xlu1 %v415_v44 }
 0x2e5   : > { %v861_v45 = vpop.f32.mrf.mxu1 }
 0x2e7   : > { %v520_v46 = vpop.f32.mrf.mxu1 }
 0x2e8   : > { %v526_v47 = vmul.f32 0.35355338, %v520_v46 }
 0x2e9   : > { %v872_v48 = vpop.f32.mrf.mxu1 }
 0x2ea   : > { %v527_v49 = vsel %vm300_vm2, %v526_v47, -10000.0 }
 0x2eb   : > { %v523_v50 = vpop.f32.mrf.mxu1  ;;  %v528_v51 = vsel %vm252_vm1, %v527_v49, -inf }
 0x2ec   : > { %529 = vmax.xlane.f32.xlu0 %v528_v51 }
 0x2ed   : > { %v873_v52 = vpop.f32.mrf.mxu1 }
 0x2ef   : > { %v632_v53 = vpop.f32.mrf.mxu1 }
 0x2f0   : > { %v638_v54 = vmul.f32 0.35355338, %v632_v53 }
 0x2f1   : > { %v884_v55 = vpop.f32.mrf.mxu1 }
 0x2f2   : > { %v639_v56 = vsel %vm300_vm2, %v638_v54, -10000.0 }
 0x2f3   : > { %v640_v57 = vsel %vm252_vm1, %v639_v56, -inf  ;;  %v635_v58 = vpop.f32.mrf.mxu1 }
 0x2f4   : > { %641 = vmax.xlane.f32.xlu1 %v640_v57 }
 0x2f5   : > { %v885_v59 = vpop.f32.mrf.mxu1 }
 0x36d   : > { %v417_v60 = vpop.xlane.xlu1 %416 }
 0x36e   : > { %v418_v61 = vsub.f32 %v414_v42, %v417_v60 }
 0x370   : > { %v419_v62 = vmul.f32 1.442695, %v418_v61 }
 0x372   : > { %912 = vpow2.f32 %v419_v62 }
 0x375   : > { %v530_v63 = vpop.xlane.xlu0 %529 }
 0x376   : > { %v531_v1 = vsub.f32 %v527_v49, %v530_v63 }
 0x378   : > { %v532_v2 = vmul.f32 1.442695, %v531_v1 }
 0x37a   : > { %914 = vpow2.f32 %v532_v2 }
 0x37d   : > { %v642_v7 = vpop.xlane.xlu1 %641 }
 0x37e   : > { %v643_v8 = vsub.f32 %v639_v56, %v642_v7 }
 0x37f   : > { %v913_v3 = vpop.eup %912 }
 0x380   : > { %v421_v4 = vsel %vm252_vm1, %v913_v3, 0.0  ;;  %v644_v9 = vmul.f32 1.442695, %v643_v8 }
 0x381   : > { %422 = vadd.xlane.f32.xlu1 %v421_v4 }
 0x382   : > { %916 = vpow2.f32 %v644_v9 }
 0x387   : > { %v915_v5 = vpop.eup %914 }
 0x388   : > { %v534_v6 = vsel %vm252_vm1, %v915_v5, 0.0 }
 0x389   : > { %535 = vadd.xlane.f32.xlu0 %v534_v6 }
 0x38f   : > { %v917_v10 = vpop.eup %916 }
 0x390   : > { %v646_v11 = vsel %vm252_vm1, %v917_v10, 0.0 }
 0x392   : > { %540 = vrot.lane.b32.xlu1 %v1014_v20, %s935_s28 }
 0x39f   : > { %428 = vrot.lane.b32.xlu0 %v1014_v20, %s934_s27 }
 0x3b6   : > { %647 = vadd.xlane.f32.xlu1 %v646_v11 }
 0x3c7   : > { %652 = vrot.lane.b32.xlu1 %v1014_v20, %s936_s29 }
 0x40a   : > { %v423_v12 = vpop.xlane.xlu1 %422 }
 0x40b   : > { %918 = vrcp.f32 %v423_v12 }
 0x40e   : > { %v541_v18 = vpop.permute.xlu1 %540 }
 0x40f   : > { %v546_v21 = vsel %vm317_vm3, %v541_v18, 0 }
 0x412   : > { %v536_v13 = vpop.xlane.xlu0 %535 }
 0x413   : > { %920 = vrcp.f32 %v536_v13 }
 0x416   : > { %v429_v14 = vpop.permute.xlu0 %428 }
 0x417   : > { %v434_v15 = vsel %vm317_vm3, %v429_v14, 0 }
 0x418   : > { %v919_v16 = vpop.eup %918  ;;  %863 = vmatpush3.bf16.msra.mxu0 %v434_v15 }
 0x419   : > { %874 = vmatprep.subr.bf16.mxu0 %v932_v0  ;;  %v425_v17 = vmul.f32 %v919_v16, %v913_v3 }
 0x41b   : > { %v426_v19 = vpack.c.bf16 %v425_v17, %v425_v17 }
 0x41d   : > { %865 = vmatmul.mubr.msk.bf16.vlgmr.msra.gmra.mxu0 %vm252_vm1, %v426_v19 }
 0x41e   : > { %875 = vmatpush3.bf16.msra.mxu0 %v546_v21  ;;  %876 = vmatprep.mubr.msk.bf16.mxu0 %vm933_vm0, %v932_v0 }
 0x41f   : > { %886 = vmatprep.subr.bf16.mxu0 %v932_v0 }
 0x420   : > { %v921_v20 = vpop.eup %920 }
 0x421   : > { %v538_v22 = vmul.f32 %v921_v20, %v915_v5 }
 0x423   : > { %v539_v23 = vpack.c.bf16 %v538_v22, %v538_v22 }
 0x425   : > { %877 = vmatmul.mubr.msk.bf16.vlgmr.msra.gmra.mxu0 %vm252_vm1, %v539_v23 }
 0x426   : > { %888 = vmatprep.mubr.msk.bf16.mxu0 %vm933_vm0, %v932_v0 }
 0x43f   : > { %v648_v24 = vpop.xlane.xlu1 %647 }
 0x440   : > { %922 = vrcp.f32 %v648_v24 }
 0x443   : > { %v653_v25 = vpop.permute.xlu1 %652 }
 0x444   : > { %v658_v26 = vsel %vm317_vm3, %v653_v25, 0 }
 0x445   : > { %887 = vmatpush3.bf16.msra.mxu0 %v658_v26 }
 0x44d   : > { %v923_v27 = vpop.eup %922 }
 0x44e   : > { %v650_v28 = vmul.f32 %v923_v27, %v917_v10 }
 0x450   : > { %v651_v29 = vpack.c.bf16 %v650_v28, %v650_v28 }
 0x452   : > { %889 = vmatmul.mubr.msk.bf16.vlgmr.msra.gmra.mxu0 %vm252_vm1, %v651_v29 }
 0x4dd   : > { %v470_v30 = vpop.f32.mrf.mxu0 }
 0x4de   : > { %701 = vrot.lane.b32.xlu0 %v470_v30, %s937_s7 }
 0x4df   : > { %v866_v31 = vpop.f32.mrf.mxu0 }
 0x4e1   : > { %v473_v32 = vpop.f32.mrf.mxu0 }
 0x4e3   : > { %v867_v33 = vpop.f32.mrf.mxu0 }
 0x4e5   : > { %v582_v34 = vpop.f32.mrf.mxu0 }
 0x4e6   : > { %705 = vrot.lane.b32.xlu1 %v582_v34, %s938_s8 }
 0x4e7   : > { %v878_v0 = vpop.f32.mrf.mxu0 }
 0x4e9   : > { %v585_v36 = vpop.f32.mrf.mxu0 }
 0x4eb   : > { %v879_v37 = vpop.f32.mrf.mxu0 }
 0x512   : > { %v694_v38 = vpop.f32.mrf.mxu0 }
 0x513   : > { %709 = vrot.lane.b32.xlu0 %v694_v38, %s939_s9 }
 0x514   : > { %v890_v39 = vpop.f32.mrf.mxu0 }
 0x516   : > { %v697_v40 = vpop.f32.mrf.mxu0 }
 0x518   : > { %v891_v41 = vpop.f32.mrf.mxu0 }
 0x550   : > { %v702_v42 = vpop.permute.xlu0 %701 }
 0x551   : > { %v712_v44 = vsel %vm252_vm1, %v1035_v35, %v702_v42 }
 0x558   : > { %v706_v43 = vpop.permute.xlu1 %705 }
 0x559   : > { %v714_v45 = vsel %vm713_vm4, %v712_v44, %v706_v43 }
 0x585   : > { %v710_v46 = vpop.permute.xlu0 %709 }
 0x586   : > { %v716_v47 = vsel %vm715_vm5, %v714_v45, %v710_v46 }
 0x587   : > { %718 = vst.msk [vmem:[%s243_s12] sm:$0xff] %vm717_vm6, %v716_v47 }
 0x588 PF: > { %s14_s15 = sadd.s32 1, %s930_s15  }
 0x589   : > { %p11_p4 = scmp.ge.s32.totalorder %s14_s15, 4  }
 0x58b   :  { %13 = sbr.rel (!%p11_p4) target bundleno = 1 (0x1), region = 75 }

</bundles_post_ra>
